<compile_context>
chip_gen: v5e
topology: v5e:2x2
jax: 0.10.0
libtpu: 0.0.40
codegen_flags: <defaults>
</compile_context>

<pallas_src>
import jax
import jax.numpy as jnp
from jax.experimental import pallas as pl
from jax.experimental.pallas import tpu as pltpu

HPAD = 16  # hidden widths (8, 9) are zero-padded to this


def mlp_kernel(x_ref, w1_ref, b1_ref, w2_ref, b2_ref, w3_ref, b3_ref, o_ref):
    x = x_ref[...]

    # fc1 + ReLU  (padded lanes stay exactly 0: zero weight cols + zero bias)
    h1 = jnp.dot(x, w1_ref[...], preferred_element_type=jnp.float32) + b1_ref[...]
    h1 = jnp.maximum(h1, 0.0)

    # fc2 + ReLU  (zero-padded rows of w2 contribute nothing)
    h2 = jnp.dot(h1, w2_ref[...], preferred_element_type=jnp.float32) + b2_ref[...]
    h2 = jnp.maximum(h2, 0.0)

    # out head (no activation); narrow (tb, 3) store is hidden behind DMA.
    o_ref[...] = jnp.dot(h2, w3_ref[...], preferred_element_type=jnp.float32) + b3_ref[...]


def _round_up(n, m):
    return ((n + m - 1) // m) * m


def prepare_params(w1, b1, w2, b2, w3, b3):
    """One-time zero-padding of weights/biases into kernel-friendly shapes.

    Call once and keep the result resident; the forward wrapper does no
    per-call parameter padding.
    """
    in_features = w1.shape[0]
    out_features = w3.shape[1]

    def pad_to(a, rows, cols):
        return jnp.pad(a, ((0, rows - a.shape[0]), (0, cols - a.shape[1])))

    w1p = pad_to(w1, in_features, HPAD)       # (4, 16)
    b1p = pad_to(b1, 1, HPAD)                 # (1, 16)
    w2p = pad_to(w2, HPAD, HPAD)              # (16, 16)
    b2p = pad_to(b2, 1, HPAD)                 # (1, 16)
    w3p = pad_to(w3, HPAD, out_features)      # (16, 3)
    b3p = pad_to(b3, 1, out_features)         # (1, 3)
    return w1p, b1p, w2p, b2p, w3p, b3p


def mlp_forward(x, padded_params, *, block_batch=4096):
    """Forward pass. `padded_params` comes from prepare_params(...)."""
    w1p, b1p, w2p, b2p, w3p, b3p = padded_params
    batch, in_features = x.shape
    out_features = w3p.shape[1]

    # --- batch tiling ---------------------------------------------------------
    batch_p = _round_up(batch, 8)                       # sublane alignment
    tb = _round_up(min(block_batch, batch_p), 8)        # tile is always mult of 8
    if batch_p > 8:
        # Ensure >= 2 grid steps when there is enough work, so v7x's two
        # TensorCores both get batch tiles (no-op on single-TC v5e/v6e).
        tb = min(tb, _round_up(pl.cdiv(batch_p, 2), 8))
    tb = max(tb, 8)
    batch_p = _round_up(batch_p, tb)
    if batch_p != batch:
        x = jnp.pad(x, ((0, batch_p - batch), (0, 0)))
    grid = (batch_p // tb,)

    const = lambda shape: pl.BlockSpec(shape, lambda i: (0, 0))

    # Actual executed (padded) work / traffic.
    flops = 2 * batch_p * (in_features * HPAD + HPAD * HPAD + HPAD * out_features)
    bytes_accessed = 4 * (
        batch_p * in_features + batch_p * out_features
        + w1p.size + b1p.size + w2p.size + b2p.size + w3p.size + b3p.size
    )

    out = pl.pallas_call(
        mlp_kernel,
        out_shape=jax.ShapeDtypeStruct((batch_p, out_features), jnp.float32),
        grid=grid,
        in_specs=[
            pl.BlockSpec((tb, in_features), lambda i: (i, 0)),  # x: tiled over batch
            const((in_features, HPAD)),                          # w1 (VMEM-resident)
            const((1, HPAD)),                                    # b1
            const((HPAD, HPAD)),                                 # w2
            const((1, HPAD)),                                    # b2
            const((HPAD, out_features)),                         # w3
            const((1, out_features)),                            # b3
        ],
        out_specs=pl.BlockSpec((tb, out_features), lambda i: (i, 0)),
        compiler_params=pltpu.CompilerParams(
            dimension_semantics=("parallel",),  # v7x: 2 TCs split the batch tiles
        ),
        cost_estimate=pl.CostEstimate(
            flops=flops, transcendentals=0, bytes_accessed=bytes_accessed),
    )(x, w1p, b1p, w2p, b2p, w3p, b3p)

    if batch_p != batch:
        out = out[:batch]
    return out


def init_params(key, in_features=4, h1=8, h2=9, out_features=3):
    """Deterministic parameter init (uniform, like PyTorch Linear default)."""
    ks = jax.random.split(key, 6)

    def linear(kw, kb, fan_in, fan_out):
        bound = 1.0 / jnp.sqrt(fan_in)
        w = jax.random.uniform(kw, (fan_in, fan_out), jnp.float32, -bound, bound)
        b = jax.random.uniform(kb, (1, fan_out), jnp.float32, -bound, bound)
        return w, b

    w1, b1 = linear(ks[0], ks[1], in_features, h1)
    w2, b2 = linear(ks[2], ks[3], h1, h2)
    w3, b3 = linear(ks[4], ks[5], h2, out_features)
    return w1, b1, w2, b2, w3, b3


if __name__ == "__main__":
    key = jax.random.PRNGKey(0)
    k_x, k_p = jax.random.split(key)

    in_features, h1, h2, out_features = 4, 8, 9, 3
    w1, b1, w2, b2, w3, b3 = init_params(k_p, in_features, h1, h2, out_features)

    # One-time parameter prep (padding hoisted out of the forward path).
    padded_params = prepare_params(w1, b1, w2, b2, w3, b3)

    def ref_fn(x):
        r = jnp.maximum(x @ w1 + b1, 0.0)
        r = jnp.maximum(r @ w2 + b2, 0.0)
        return r @ w3 + b3

    # Small case (natural module input): batch=8, single grid step.
    x_small = jax.random.normal(k_x, (8, in_features), jnp.float32)
    y_small = mlp_forward(x_small, padded_params)
    jax.block_until_ready(y_small)
    assert y_small.shape == (8, out_features)
    assert jnp.allclose(y_small, ref_fn(x_small), atol=1e-5, rtol=1e-5)

    # Multi-tile case: exercises the batch grid + batch-padding path.
    x_big = jax.random.normal(k_x, (600, in_features), jnp.float32)
    y_big = mlp_forward(x_big, padded_params, block_batch=256)
    jax.block_until_ready(y_big)
    assert y_big.shape == (600, out_features)
    assert jnp.allclose(y_big, ref_fn(x_big), atol=1e-4, rtol=1e-4)

    print("KERNEL_OK")
</pallas_src>

<mosaic_0001>
module attributes {stable_mosaic.version = 11 : i64} {
  func.func @mlp_kernel(%arg0: i32, %arg1: memref<8x4xf32, #tpu.memory_space<vmem>>, %arg2: memref<4x16xf32, #tpu.memory_space<vmem>>, %arg3: memref<1x16xf32, #tpu.memory_space<vmem>>, %arg4: memref<16x16xf32, #tpu.memory_space<vmem>>, %arg5: memref<1x16xf32, #tpu.memory_space<vmem>>, %arg6: memref<16x3xf32, #tpu.memory_space<vmem>>, %arg7: memref<1x3xf32, #tpu.memory_space<vmem>>, %arg8: memref<8x3xf32, #tpu.memory_space<vmem>>) attributes {dimension_semantics = [#tpu.dimension_semantics<parallel>], iteration_bounds = array<i64: 1>, scalar_prefetch = 0 : i64, scratch_operands = 0 : i64, tpu.core_type = #tpu.core_type<tc>, window_params = [{transform_indices = @transform_0, window_bounds = array<i64: 8, 4>}, {pipeline_mode = #tpu.pipeline_mode<synchronous>, transform_indices = @transform_1, window_bounds = array<i64: 4, 16>}, {pipeline_mode = #tpu.pipeline_mode<synchronous>, transform_indices = @transform_2, window_bounds = array<i64: 1, 16>}, {pipeline_mode = #tpu.pipeline_mode<synchronous>, transform_indices = @transform_3, window_bounds = array<i64: 16, 16>}, {pipeline_mode = #tpu.pipeline_mode<synchronous>, transform_indices = @transform_4, window_bounds = array<i64: 1, 16>}, {pipeline_mode = #tpu.pipeline_mode<synchronous>, transform_indices = @transform_5, window_bounds = array<i64: 16, 3>}, {pipeline_mode = #tpu.pipeline_mode<synchronous>, transform_indices = @transform_6, window_bounds = array<i64: 1, 3>}, {transform_indices = @transform_7, window_bounds = array<i64: 8, 3>}]} {
    %c0 = arith.constant 0 : index
    %c0_0 = arith.constant 0 : index
    %0 = vector.load %arg1[%c0, %c0_0] : memref<8x4xf32, #tpu.memory_space<vmem>>, vector<8x4xf32>
    %c0_1 = arith.constant 0 : index
    %c0_2 = arith.constant 0 : index
    %1 = vector.load %arg2[%c0_1, %c0_2] : memref<4x16xf32, #tpu.memory_space<vmem>>, vector<4x16xf32>
    %cst = arith.constant dense<0.000000e+00> : vector<8x16xf32>
    %2 = tpu.matmul %0, %1, %cst {dimension_numbers = #tpu.dot_dimension_numbers<[1], [0], [0], [1], [0, 0, 1, 1], [], []>} : vector<8x4xf32>, vector<4x16xf32>, vector<8x16xf32> -> vector<8x16xf32>
    %c0_3 = arith.constant 0 : index
    %c0_4 = arith.constant 0 : index
    %3 = vector.load %arg3[%c0_3, %c0_4] : memref<1x16xf32, #tpu.memory_space<vmem>>, vector<1x16xf32>
    %4 = vector.broadcast %3 : vector<1x16xf32> to vector<8x16xf32>
    %5 = arith.addf %2, %4 : vector<8x16xf32>
    %cst_5 = arith.constant 0.000000e+00 : f32
    %6 = vector.broadcast %cst_5 : f32 to vector<8x16xf32>
    %7 = arith.maximumf %5, %6 : vector<8x16xf32>
    %c0_6 = arith.constant 0 : index
    %c0_7 = arith.constant 0 : index
    %8 = vector.load %arg4[%c0_6, %c0_7] : memref<16x16xf32, #tpu.memory_space<vmem>>, vector<16x16xf32>
    %cst_8 = arith.constant dense<0.000000e+00> : vector<8x16xf32>
    %9 = tpu.matmul %7, %8, %cst_8 {dimension_numbers = #tpu.dot_dimension_numbers<[1], [0], [0], [1], [0, 0, 1, 1], [], []>} : vector<8x16xf32>, vector<16x16xf32>, vector<8x16xf32> -> vector<8x16xf32>
    %c0_9 = arith.constant 0 : index
    %c0_10 = arith.constant 0 : index
    %10 = vector.load %arg5[%c0_9, %c0_10] : memref<1x16xf32, #tpu.memory_space<vmem>>, vector<1x16xf32>
    %11 = vector.broadcast %10 : vector<1x16xf32> to vector<8x16xf32>
    %12 = arith.addf %9, %11 : vector<8x16xf32>
    %cst_11 = arith.constant 0.000000e+00 : f32
    %13 = vector.broadcast %cst_11 : f32 to vector<8x16xf32>
    %14 = arith.maximumf %12, %13 : vector<8x16xf32>
    %c0_12 = arith.constant 0 : index
    %c0_13 = arith.constant 0 : index
    %15 = vector.load %arg6[%c0_12, %c0_13] : memref<16x3xf32, #tpu.memory_space<vmem>>, vector<16x3xf32>
    %cst_14 = arith.constant dense<0.000000e+00> : vector<8x3xf32>
    %16 = tpu.matmul %14, %15, %cst_14 {dimension_numbers = #tpu.dot_dimension_numbers<[1], [0], [0], [1], [0, 0, 1, 1], [], []>} : vector<8x16xf32>, vector<16x3xf32>, vector<8x3xf32> -> vector<8x3xf32>
    %c0_15 = arith.constant 0 : index
    %c0_16 = arith.constant 0 : index
    %17 = vector.load %arg7[%c0_15, %c0_16] : memref<1x3xf32, #tpu.memory_space<vmem>>, vector<1x3xf32>
    %18 = vector.broadcast %17 : vector<1x3xf32> to vector<8x3xf32>
    %19 = arith.addf %16, %18 : vector<8x3xf32>
    %c0_17 = arith.constant 0 : index
    %c0_18 = arith.constant 0 : index
    %20 = vector.load %arg8[%c0_17, %c0_18] : memref<8x3xf32, #tpu.memory_space<vmem>>, vector<8x3xf32>
    tpu.vector_store %arg8[%c0_17, %c0_18], %19 {strides = array<i32>} : memref<8x3xf32, #tpu.memory_space<vmem>>, vector<8x3xf32>,
    return
  }
  func.func @transform_0(%arg0: i32) -> (i32, i32) {
    %c0_i32 = arith.constant 0 : i32
    %c0_i32_0 = arith.constant 0 : i32
    return %arg0, %c0_i32 : i32, i32
  }
  func.func @transform_1(%arg0: i32) -> (i32, i32) {
    %c0_i32 = arith.constant 0 : i32
    %c0_i32_0 = arith.constant 0 : i32
    %c0_i32_1 = arith.constant 0 : i32
    return %c0_i32, %c0_i32_0 : i32, i32
  }
  func.func @transform_2(%arg0: i32) -> (i32, i32) {
    %c0_i32 = arith.constant 0 : i32
    %c0_i32_0 = arith.constant 0 : i32
    %c0_i32_1 = arith.constant 0 : i32
    return %c0_i32, %c0_i32_0 : i32, i32
  }
  func.func @transform_3(%arg0: i32) -> (i32, i32) {
    %c0_i32 = arith.constant 0 : i32
    %c0_i32_0 = arith.constant 0 : i32
    %c0_i32_1 = arith.constant 0 : i32
    return %c0_i32, %c0_i32_0 : i32, i32
  }
  func.func @transform_4(%arg0: i32) -> (i32, i32) {
    %c0_i32 = arith.constant 0 : i32
    %c0_i32_0 = arith.constant 0 : i32
    %c0_i32_1 = arith.constant 0 : i32
    return %c0_i32, %c0_i32_0 : i32, i32
  }
  func.func @transform_5(%arg0: i32) -> (i32, i32) {
    %c0_i32 = arith.constant 0 : i32
    %c0_i32_0 = arith.constant 0 : i32
    %c0_i32_1 = arith.constant 0 : i32
    return %c0_i32, %c0_i32_0 : i32, i32
  }
  func.func @transform_6(%arg0: i32) -> (i32, i32) {
    %c0_i32 = arith.constant 0 : i32
    %c0_i32_0 = arith.constant 0 : i32
    %c0_i32_1 = arith.constant 0 : i32
    return %c0_i32, %c0_i32_0 : i32, i32
  }
  func.func @transform_7(%arg0: i32) -> (i32, i32) {
    %c0_i32 = arith.constant 0 : i32
    %c0_i32_0 = arith.constant 0 : i32
    return %arg0, %c0_i32 : i32, i32
  }
}

</mosaic_0001>

<bundles_post_ra>
// kernel: tpu_custom_call.1
= control target key start
LH: loop header
LB: loop body
LE: loop exit
PB: predicated region body
PF: predicated region fallthrough
CT: control target
= control target key end

     0   :  { %vm36_vm0 = vcmask 1043456   ;;  %vm32_vm1 = vcmask 31744   ;;  %vm67_vm2 = vcmask 130048   ;;  %vm121_vm3 = vcmask 23552   ;;  %s204_s1 = inlined_call_operand.vmem [shape: f32[4,16], index: 1, kind: input, shape index: {}]   ;;  %s205_s0 = inlined_call_operand.vmem [shape: f32[8,4], index: 0, kind: input, shape index: {}]   ;;  %s206_s2 = inlined_call_operand.vmem [shape: f32[1,16], index: 2, kind: input, shape index: {}]   ;;  %s207_s4 = inlined_call_operand.vmem [shape: f32[1,16], index: 4, kind: input, shape index: {}]   ;;  %s208_s3 = inlined_call_operand.vmem [shape: f32[16,16], index: 3, kind: input, shape index: {}]   ;;  %s209_s6 = inlined_call_operand.vmem [shape: f32[1,3], index: 6, kind: input, shape index: {}]   ;;  %s210_s5 = inlined_call_operand.vmem [shape: f32[16,3], index: 5, kind: input, shape index: {}]   ;;  %s211_s7 = inlined_call_operand.vmem [shape: f32[8,3], index: 7, kind: output, shape index: {}]  }
   0x1   :  { %v27_v0 = vld [vmem:[%s204_s1] sm:$0xf]  ;;  %v62_v2 = vld [vmem:[%s208_s3 + $0x8] sm:$0xff] }
   0x2   :  { %v26_v1 = vld [vmem:[%s205_s0] sm:$0xff]  ;;  %127 = vmatpush.msk.msra.mxu0 %vm36_vm0, %v27_v0  ;;  %85 = vmatpush.msra.mxu1 %v62_v2  ;;  %v93_v8 = vld [vmem:[%s210_s5 + $0x8] sm:$0xff] }
   0x3   :  { %128 = vmatmul.msk.f32.vlgmr.msra.gmra.mxu0 %vm32_vm1, %v26_v1  ;;  %v61_v3 = vld [vmem:[%s208_s3] sm:$0xff]  ;;  %115 = vmatpush.msra.mxu2 %v93_v8 }
   0x4   :  { %86 = vmatpush.msra.mxu1 %v61_v3  ;;  %v131_v4 = vld [vmem:[%s206_s2] ss:$0 sm:$0xff] }
   0x5   :  { %v92_v9 = vld [vmem:[%s210_s5] sm:$0xff] }
   0x6   :  { %116 = vmatpush.msra.mxu2 %v92_v9  ;;  %v132_v10 = vld [vmem:[%s207_s4] ss:$0 sm:$0xff] }
   0x7   :  { %v133_v14 = vld [vmem:[%s209_s6] ss:$0 sm:$0xff] }
  0x80   :  { %v57_v5 = vpop.f32.mrf.mxu0 }
  0x81   :  { %v58_v6 = vadd.f32 %v131_v4, %v57_v5 }
  0x83   :  { %v60_v7 = vmax.f32 %v58_v6, 0.0 }
  0x85   :  { %129 = vmatmul.msk.f32.vlgmr.msra.gmra.mxu1 %vm67_vm2, %v60_v7 }
 0x102   :  { %v88_v11 = vpop.f32.mrf.mxu1 }
 0x103   :  { %v89_v12 = vadd.f32 %v132_v10, %v88_v11 }
 0x105   :  { %v91_v13 = vmax.f32 %v89_v12, 0.0 }
 0x107   :  { %130 = vmatmul.msk.f32.vlgmr.msra.gmra.mxu2 %vm67_vm2, %v91_v13 }
 0x18a   :  { %v118_v15 = vpop.f32.mrf.mxu2 }
 0x18b   :  { %v119_v16 = vadd.f32 %v133_v14, %v118_v15 }
 0x18d   :  { %122 = vst.msk [vmem:[%s211_s7] sm:$0xff] %vm121_vm3, %v119_v16 }

</bundles_post_ra>
